<compile_context>
chip_gen: v6e
topology: v6e:2x2x1
jax: 0.10.0
libtpu: 0.0.40
codegen_flags: <defaults>
</compile_context>

<pallas_src>
import functools

import jax
import jax.numpy as jnp
from jax.experimental import pallas as pl
from jax.experimental.pallas import tpu as pltpu

IMG_DIM = 28 * 28               # 784
TRAJ_DIM = 200
LAYER_DIM = IMG_DIM + TRAJ_DIM  # 984
FEAT_PAD = 1024                 # lane-dense padded feature width (multiple of 128)
HIDDEN_DIM = 128
LATENT_DIM = 64
LATENT_PAD = 128                # lane-dense padded latent width
NOISE_FACTOR = 0.5
TM_MAX = 256                    # max rows per batch tile


def _round_up(x, m):
    return ((x + m - 1) // m) * m


# ----------------------------- Pallas kernel --------------------------------
def _dae_mlp_kernel(x_ref,
                    w1_ref, b1_ref,   # encoder layer 1: (FEAT_PAD, H) bf16, (1, H) f32
                    w2_ref, b2_ref,   # encoder layer 2: (H, LATENT_PAD) bf16, (1, LATENT_PAD) f32
                    w3_ref, b3_ref,   # decoder layer 1: (LATENT_PAD, H) bf16, (1, H) f32
                    w4_ref, b4_ref,   # decoder layer 2: (H, FEAT_PAD) bf16, (1, FEAT_PAD) f32
                    tmp_ref, z_ref):
    """Fused encoder+decoder MLP for one (TM, FEAT_PAD) batch tile."""
    x = x_ref[...]                                               # bf16 (TM, FEAT_PAD)

    # Encoder: Linear -> ReLU -> Linear  (bf16 MXU operands, f32 accumulate)
    h1 = jnp.dot(x, w1_ref[...], preferred_element_type=jnp.float32) + b1_ref[...]
    h1 = jnp.maximum(h1, 0.0).astype(jnp.bfloat16)
    z = jnp.dot(h1, w2_ref[...], preferred_element_type=jnp.float32) + b2_ref[...]
    z_ref[...] = z.astype(z_ref.dtype)

    # Decoder: Linear -> ReLU -> Linear
    h2 = jnp.dot(z.astype(jnp.bfloat16), w3_ref[...],
                 preferred_element_type=jnp.float32) + b3_ref[...]
    h2 = jnp.maximum(h2, 0.0).astype(jnp.bfloat16)
    out = jnp.dot(h2, w4_ref[...], preferred_element_type=jnp.float32) + b4_ref[...]
    tmp_ref[...] = out.astype(tmp_ref.dtype)


@jax.jit
def _run_dae_mlp(data, params):
    """Invoke the fused MLP kernel on (batch, LAYER_DIM) f32 data."""
    batch = data.shape[0]
    tm = min(TM_MAX, _round_up(batch, 16))        # rows per tile (bf16 sublane-friendly)
    padded_batch = _round_up(batch, tm)

    # Pad batch rows and feature columns (zeros) and cast the streamed input to bf16.
    data = jnp.pad(data.astype(jnp.bfloat16),
                   ((0, padded_batch - batch), (0, FEAT_PAD - LAYER_DIM)))

    row_tile = lambda i: (i, 0)   # activation tiles march down the batch axis
    resident = lambda i: (0, 0)   # weights/biases: same block every step -> DMA'd once

    grid_spec = pltpu.PrefetchScalarGridSpec(
        num_scalar_prefetch=0,
        grid=(padded_batch // tm,),
        in_specs=[
            pl.BlockSpec((tm, FEAT_PAD), row_tile),
            pl.BlockSpec((FEAT_PAD, HIDDEN_DIM), resident),
            pl.BlockSpec((1, HIDDEN_DIM), resident),
            pl.BlockSpec((HIDDEN_DIM, LATENT_PAD), resident),
            pl.BlockSpec((1, LATENT_PAD), resident),
            pl.BlockSpec((LATENT_PAD, HIDDEN_DIM), resident),
            pl.BlockSpec((1, HIDDEN_DIM), resident),
            pl.BlockSpec((HIDDEN_DIM, FEAT_PAD), resident),
            pl.BlockSpec((1, FEAT_PAD), resident),
        ],
        out_specs=(
            pl.BlockSpec((tm, FEAT_PAD), row_tile),
            pl.BlockSpec((tm, LATENT_PAD), row_tile),
        ),
    )

    tmp, z = pl.pallas_call(
        _dae_mlp_kernel,
        out_shape=(
            jax.ShapeDtypeStruct((padded_batch, FEAT_PAD), jnp.float32),
            jax.ShapeDtypeStruct((padded_batch, LATENT_PAD), jnp.float32),
        ),
        grid_spec=grid_spec,
        compiler_params=pltpu.CompilerParams(
            dimension_semantics=("parallel",)),   # megacore sharding on v7x
    )(data,
      params["w1"], params["b1"],
      params["w2"], params["b2"],
      params["w3"], params["b3"],
      params["w4"], params["b4"])

    # Strip batch/feature/latent padding.
    return tmp[:batch, :LAYER_DIM], z[:batch, :LATENT_DIM]


# ------------------------------- JAX glue ------------------------------------
def init_params(key):
    """Deterministic parameter init (PyTorch Linear-style uniform +-1/sqrt(fan_in))."""
    ks = jax.random.split(key, 8)

    def lin(kw, kb, fan_in, fan_out):
        bound = 1.0 / jnp.sqrt(jnp.float32(fan_in))
        w = jax.random.uniform(kw, (fan_in, fan_out), jnp.float32, -bound, bound)
        b = jax.random.uniform(kb, (1, fan_out), jnp.float32, -bound, bound)
        return w, b

    enc_w1, enc_b1 = lin(ks[0], ks[1], LAYER_DIM, HIDDEN_DIM)
    enc_w2, enc_b2 = lin(ks[2], ks[3], HIDDEN_DIM, LATENT_DIM)
    dec_w1, dec_b1 = lin(ks[4], ks[5], LATENT_DIM, HIDDEN_DIM)
    dec_w2, dec_b2 = lin(ks[6], ks[7], HIDDEN_DIM, LAYER_DIM)
    return dict(enc_w1=enc_w1, enc_b1=enc_b1, enc_w2=enc_w2, enc_b2=enc_b2,
                dec_w1=dec_w1, dec_b1=dec_b1, dec_w2=dec_w2, dec_b2=dec_b2)


def pack_params(p):
    """Zero-pad parameters to lane-dense shapes; weights -> bf16 (MXU), biases -> f32."""
    def padw(w, rows, cols):
        return jnp.pad(w, ((0, rows - w.shape[0]), (0, cols - w.shape[1]))
                       ).astype(jnp.bfloat16)

    def padb(b, cols):
        return jnp.pad(b, ((0, 0), (0, cols - b.shape[1]))).astype(jnp.float32)

    return dict(
        w1=padw(p["enc_w1"], FEAT_PAD, HIDDEN_DIM),   # padded input rows are zero
        b1=padb(p["enc_b1"], HIDDEN_DIM),
        w2=padw(p["enc_w2"], HIDDEN_DIM, LATENT_PAD), # padded latent cols are zero
        b2=padb(p["enc_b2"], LATENT_PAD),             # padded latent biases are zero
        w3=padw(p["dec_w1"], LATENT_PAD, HIDDEN_DIM), # padded latent rows are zero
        b3=padb(p["dec_b1"], HIDDEN_DIM),
        w4=padw(p["dec_w2"], HIDDEN_DIM, FEAT_PAD),   # padded output cols are zero
        b4=padb(p["dec_b2"], FEAT_PAD),
    )


def add_noise(x, key, noise_factor):
    """x + noise_factor * randn, clamped to [min(x), max(x)] per modality tensor."""
    x_noisy = {}
    keys = jax.random.split(key, len(x))
    for k, (name, mod) in zip(keys, x.items()):
        noise = jax.random.normal(k, mod.shape, mod.dtype) * noise_factor
        x_noisy[name] = jnp.clip(mod + noise, jnp.min(mod), jnp.max(mod))
    return x_noisy


def mhddae_forward(x, params, key, sample=False, noise_factor=NOISE_FACTOR):
    """Reproduces MHDDAE.forward: noise -> flatten/concat -> encoder -> decoder -> split."""
    if (sample is False) and (noise_factor != 0):
        x = add_noise(x, key, noise_factor)

    flats = []
    for d in x.values():
        if d.ndim > 2:
            d = d.reshape(d.shape[0], -1)
        flats.append(d)
    data = jnp.concatenate(flats, axis=-1)          # (B, 984)

    tmp, z = _run_dae_mlp(data, params)             # (B, 984), (B, 64)

    modality_dims = [0, IMG_DIM, TRAJ_DIM]
    x_hat = {}
    for idx, key_name in enumerate(x.keys()):
        start = modality_dims[idx]
        size = modality_dims[idx + 1]
        chunk = tmp[:, start:start + size]
        if key_name == "image":
            chunk = chunk.reshape(chunk.shape[0], 1, 28, 28)
        x_hat[key_name] = chunk
    return x_hat, z


# --------------------------------- main ---------------------------------------
if __name__ == "__main__":
    root = jax.random.PRNGKey(0)
    k_params, k_img, k_traj, k_noise = jax.random.split(root, 4)

    params = pack_params(init_params(k_params))

    batch = 2
    x = {
        "image": jax.random.uniform(k_img, (batch, 1, 28, 28), jnp.float32),
        "trajectory": jax.random.normal(k_traj, (batch, TRAJ_DIM), jnp.float32),
    }

    x_hat, z = mhddae_forward(x, params, k_noise, sample=False)
    jax.block_until_ready((x_hat["image"], x_hat["trajectory"], z))

    assert x_hat["image"].shape == (batch, 1, 28, 28)
    assert x_hat["trajectory"].shape == (batch, TRAJ_DIM)
    assert z.shape == (batch, LATENT_DIM)
    assert bool(jnp.all(jnp.isfinite(x_hat["image"])))
    assert bool(jnp.all(jnp.isfinite(z)))
    print("KERNEL_OK")
</pallas_src>

<mosaic_0001>
module attributes {stable_mosaic.version = 11 : i64} {
  func.func @_dae_mlp_kernel(%arg0: i32, %arg1: memref<16x1024xbf16, #tpu.memory_space<vmem>>, %arg2: memref<1024x128xbf16, #tpu.memory_space<vmem>>, %arg3: memref<1x128xf32, #tpu.memory_space<vmem>>, %arg4: memref<128x128xbf16, #tpu.memory_space<vmem>>, %arg5: memref<1x128xf32, #tpu.memory_space<vmem>>, %arg6: memref<128x128xbf16, #tpu.memory_space<vmem>>, %arg7: memref<1x128xf32, #tpu.memory_space<vmem>>, %arg8: memref<128x1024xbf16, #tpu.memory_space<vmem>>, %arg9: memref<1x1024xf32, #tpu.memory_space<vmem>>, %arg10: memref<16x1024xf32, #tpu.memory_space<vmem>>, %arg11: memref<16x128xf32, #tpu.memory_space<vmem>>) attributes {dimension_semantics = [#tpu.dimension_semantics<parallel>], iteration_bounds = array<i64: 1>, scalar_prefetch = 0 : i64, scratch_operands = 0 : i64, tpu.core_type = #tpu.core_type<tc>, window_params = [{transform_indices = @transform_0, window_bounds = array<i64: 16, 1024>}, {pipeline_mode = #tpu.pipeline_mode<synchronous>, transform_indices = @transform_1, window_bounds = array<i64: 1024, 128>}, {pipeline_mode = #tpu.pipeline_mode<synchronous>, transform_indices = @transform_2, window_bounds = array<i64: 1, 128>}, {pipeline_mode = #tpu.pipeline_mode<synchronous>, transform_indices = @transform_3, window_bounds = array<i64: 128, 128>}, {pipeline_mode = #tpu.pipeline_mode<synchronous>, transform_indices = @transform_4, window_bounds = array<i64: 1, 128>}, {pipeline_mode = #tpu.pipeline_mode<synchronous>, transform_indices = @transform_5, window_bounds = array<i64: 128, 128>}, {pipeline_mode = #tpu.pipeline_mode<synchronous>, transform_indices = @transform_6, window_bounds = array<i64: 1, 128>}, {pipeline_mode = #tpu.pipeline_mode<synchronous>, transform_indices = @transform_7, window_bounds = array<i64: 128, 1024>}, {pipeline_mode = #tpu.pipeline_mode<synchronous>, transform_indices = @transform_8, window_bounds = array<i64: 1, 1024>}, {transform_indices = @transform_9, window_bounds = array<i64: 16, 1024>}, {transform_indices = @transform_10, window_bounds = array<i64: 16, 128>}]} {
    %c0 = arith.constant 0 : index
    %c0_0 = arith.constant 0 : index
    %0 = vector.load %arg1[%c0, %c0_0] : memref<16x1024xbf16, #tpu.memory_space<vmem>>, vector<16x1024xbf16>
    %c0_1 = arith.constant 0 : index
    %c0_2 = arith.constant 0 : index
    %1 = vector.load %arg2[%c0_1, %c0_2] : memref<1024x128xbf16, #tpu.memory_space<vmem>>, vector<1024x128xbf16>
    %cst = arith.constant dense<0.000000e+00> : vector<16x128xf32>
    %2 = tpu.matmul %0, %1, %cst {dimension_numbers = #tpu.dot_dimension_numbers<[1], [0], [0], [1], [0, 0, 1, 1], [], []>} : vector<16x1024xbf16>, vector<1024x128xbf16>, vector<16x128xf32> -> vector<16x128xf32>
    %c0_3 = arith.constant 0 : index
    %c0_4 = arith.constant 0 : index
    %3 = vector.load %arg3[%c0_3, %c0_4] : memref<1x128xf32, #tpu.memory_space<vmem>>, vector<1x128xf32>
    %4 = vector.broadcast %3 : vector<1x128xf32> to vector<16x128xf32>
    %5 = arith.addf %2, %4 : vector<16x128xf32>
    %cst_5 = arith.constant 0.000000e+00 : f32
    %6 = vector.broadcast %cst_5 : f32 to vector<16x128xf32>
    %7 = arith.maximumf %5, %6 : vector<16x128xf32>
    %8 = arith.truncf %7 : vector<16x128xf32> to vector<16x128xbf16>
    %c0_6 = arith.constant 0 : index
    %c0_7 = arith.constant 0 : index
    %9 = vector.load %arg4[%c0_6, %c0_7] : memref<128x128xbf16, #tpu.memory_space<vmem>>, vector<128x128xbf16>
    %cst_8 = arith.constant dense<0.000000e+00> : vector<16x128xf32>
    %10 = tpu.matmul %8, %9, %cst_8 {dimension_numbers = #tpu.dot_dimension_numbers<[1], [0], [0], [1], [0, 0, 1, 1], [], []>} : vector<16x128xbf16>, vector<128x128xbf16>, vector<16x128xf32> -> vector<16x128xf32>
    %c0_9 = arith.constant 0 : index
    %c0_10 = arith.constant 0 : index
    %11 = vector.load %arg5[%c0_9, %c0_10] : memref<1x128xf32, #tpu.memory_space<vmem>>, vector<1x128xf32>
    %12 = vector.broadcast %11 : vector<1x128xf32> to vector<16x128xf32>
    %13 = arith.addf %10, %12 : vector<16x128xf32>
    %c0_11 = arith.constant 0 : index
    %c0_12 = arith.constant 0 : index
    %14 = vector.load %arg11[%c0_11, %c0_12] : memref<16x128xf32, #tpu.memory_space<vmem>>, vector<16x128xf32>
    tpu.vector_store %arg11[%c0_11, %c0_12], %13 {strides = array<i32>} : memref<16x128xf32, #tpu.memory_space<vmem>>, vector<16x128xf32>,
    %15 = arith.truncf %13 : vector<16x128xf32> to vector<16x128xbf16>
    %c0_13 = arith.constant 0 : index
    %c0_14 = arith.constant 0 : index
    %16 = vector.load %arg6[%c0_13, %c0_14] : memref<128x128xbf16, #tpu.memory_space<vmem>>, vector<128x128xbf16>
    %cst_15 = arith.constant dense<0.000000e+00> : vector<16x128xf32>
    %17 = tpu.matmul %15, %16, %cst_15 {dimension_numbers = #tpu.dot_dimension_numbers<[1], [0], [0], [1], [0, 0, 1, 1], [], []>} : vector<16x128xbf16>, vector<128x128xbf16>, vector<16x128xf32> -> vector<16x128xf32>
    %c0_16 = arith.constant 0 : index
    %c0_17 = arith.constant 0 : index
    %18 = vector.load %arg7[%c0_16, %c0_17] : memref<1x128xf32, #tpu.memory_space<vmem>>, vector<1x128xf32>
    %19 = vector.broadcast %18 : vector<1x128xf32> to vector<16x128xf32>
    %20 = arith.addf %17, %19 : vector<16x128xf32>
    %cst_18 = arith.constant 0.000000e+00 : f32
    %21 = vector.broadcast %cst_18 : f32 to vector<16x128xf32>
    %22 = arith.maximumf %20, %21 : vector<16x128xf32>
    %23 = arith.truncf %22 : vector<16x128xf32> to vector<16x128xbf16>
    %c0_19 = arith.constant 0 : index
    %c0_20 = arith.constant 0 : index
    %24 = vector.load %arg8[%c0_19, %c0_20] : memref<128x1024xbf16, #tpu.memory_space<vmem>>, vector<128x1024xbf16>
    %cst_21 = arith.constant dense<0.000000e+00> : vector<16x1024xf32>
    %25 = tpu.matmul %23, %24, %cst_21 {dimension_numbers = #tpu.dot_dimension_numbers<[1], [0], [0], [1], [0, 0, 1, 1], [], []>} : vector<16x128xbf16>, vector<128x1024xbf16>, vector<16x1024xf32> -> vector<16x1024xf32>
    %c0_22 = arith.constant 0 : index
    %c0_23 = arith.constant 0 : index
    %26 = vector.load %arg9[%c0_22, %c0_23] : memref<1x1024xf32, #tpu.memory_space<vmem>>, vector<1x1024xf32>
    %27 = vector.broadcast %26 : vector<1x1024xf32> to vector<16x1024xf32>
    %28 = arith.addf %25, %27 : vector<16x1024xf32>
    %c0_24 = arith.constant 0 : index
    %c0_25 = arith.constant 0 : index
    %29 = vector.load %arg10[%c0_24, %c0_25] : memref<16x1024xf32, #tpu.memory_space<vmem>>, vector<16x1024xf32>
    tpu.vector_store %arg10[%c0_24, %c0_25], %28 {strides = array<i32>} : memref<16x1024xf32, #tpu.memory_space<vmem>>, vector<16x1024xf32>,
    return
  }
  func.func @transform_0(%arg0: i32) -> (i32, i32) {
    %c0_i32 = arith.constant 0 : i32
    %c0_i32_0 = arith.constant 0 : i32
    return %arg0, %c0_i32 : i32, i32
  }
  func.func @transform_1(%arg0: i32) -> (i32, i32) {
    %c0_i32 = arith.constant 0 : i32
    %c0_i32_0 = arith.constant 0 : i32
    %c0_i32_1 = arith.constant 0 : i32
    return %c0_i32, %c0_i32_0 : i32, i32
  }
  func.func @transform_2(%arg0: i32) -> (i32, i32) {
    %c0_i32 = arith.constant 0 : i32
    %c0_i32_0 = arith.constant 0 : i32
    %c0_i32_1 = arith.constant 0 : i32
    return %c0_i32, %c0_i32_0 : i32, i32
  }
  func.func @transform_3(%arg0: i32) -> (i32, i32) {
    %c0_i32 = arith.constant 0 : i32
    %c0_i32_0 = arith.constant 0 : i32
    %c0_i32_1 = arith.constant 0 : i32
    return %c0_i32, %c0_i32_0 : i32, i32
  }
  func.func @transform_4(%arg0: i32) -> (i32, i32) {
    %c0_i32 = arith.constant 0 : i32
    %c0_i32_0 = arith.constant 0 : i32
    %c0_i32_1 = arith.constant 0 : i32
    return %c0_i32, %c0_i32_0 : i32, i32
  }
  func.func @transform_5(%arg0: i32) -> (i32, i32) {
    %c0_i32 = arith.constant 0 : i32
    %c0_i32_0 = arith.constant 0 : i32
    %c0_i32_1 = arith.constant 0 : i32
    return %c0_i32, %c0_i32_0 : i32, i32
  }
  func.func @transform_6(%arg0: i32) -> (i32, i32) {
    %c0_i32 = arith.constant 0 : i32
    %c0_i32_0 = arith.constant 0 : i32
    %c0_i32_1 = arith.constant 0 : i32
    return %c0_i32, %c0_i32_0 : i32, i32
  }
  func.func @transform_7(%arg0: i32) -> (i32, i32) {
    %c0_i32 = arith.constant 0 : i32
    %c0_i32_0 = arith.constant 0 : i32
    %c0_i32_1 = arith.constant 0 : i32
    return %c0_i32, %c0_i32_0 : i32, i32
  }
  func.func @transform_8(%arg0: i32) -> (i32, i32) {
    %c0_i32 = arith.constant 0 : i32
    %c0_i32_0 = arith.constant 0 : i32
    %c0_i32_1 = arith.constant 0 : i32
    return %c0_i32, %c0_i32_0 : i32, i32
  }
  func.func @transform_9(%arg0: i32) -> (i32, i32) {
    %c0_i32 = arith.constant 0 : i32
    %c0_i32_0 = arith.constant 0 : i32
    return %arg0, %c0_i32 : i32, i32
  }
  func.func @transform_10(%arg0: i32) -> (i32, i32) {
    %c0_i32 = arith.constant 0 : i32
    %c0_i32_0 = arith.constant 0 : i32
    return %arg0, %c0_i32 : i32, i32
  }
}

</mosaic_0001>

<bundles_post_ra>
// kernel: _run_dae_mlp.1
= control target key start
LH: loop header
LB: loop body
LE: loop exit
PB: predicated region body
PF: predicated region fallthrough
CT: control target
= control target key end

     0   :  { %16 = vsyncpa [#allocation3], 0  ;;  %s2331_s0 = inlined_call_operand.vmem [shape: bf16[16,1024], index: 0, kind: input, shape index: {}]   ;;  %s2332_s1 = inlined_call_operand.hbm [shape: bf16[1024,128], index: 1, kind: input, shape index: {}]   ;;  %s2333_s2 = inlined_call_operand.vmem [shape: f32[1,128], index: 2, kind: input, shape index: {}]   ;;  %s2334_s3 = inlined_call_operand.vmem [shape: bf16[128,128], index: 3, kind: input, shape index: {}]   ;;  %s2335_s4 = inlined_call_operand.vmem [shape: f32[1,128], index: 4, kind: input, shape index: {}]   ;;  %s2336_s5 = inlined_call_operand.hbm [shape: bf16[128,128], index: 5, kind: input, shape index: {}]   ;;  %s2337_s6 = inlined_call_operand.vmem [shape: f32[1,128], index: 6, kind: input, shape index: {}]   ;;  %s2338_s7 = inlined_call_operand.hbm [shape: bf16[128,1024], index: 7, kind: input, shape index: {}]   ;;  %s2339_s8 = inlined_call_operand.vmem [shape: f32[1,1024], index: 8, kind: input, shape index: {}]   ;;  %s2340_s9 = inlined_call_operand.vmem [shape: f32[16,1024], index: 9, kind: output, shape index: {0}]   ;;  %s2341_s10 = inlined_call_operand.vmem [shape: f32[16,128], index: 10, kind: output, shape index: {1}]  }
   0x1   :  { %17 = vsyncpa [#allocation5], 0  ;;  %s2119_s13 = smov [#allocation4]   ;;  %s2120_s15 = smov [#allocation2]  }
   0x2   :  { %s43_s14 = sshll.u32 %s2119_s13, 4  ;;  %s25_s16 = sshll.u32 %s2120_s15, 4  ;;  %s44_s14 = int_to_ptr.vmem [resolvable:$true] %s43_s14  ;;  %s26_s16 = int_to_ptr.vmem [resolvable:$true] %s25_s16 }
   0x3   :  { %s2063_s17 = scalar_lea.vmem %s44_s14, 1024  ;;  %p2068_p1 = scmp.lt.s32.totalorder %s44_s14, %s44_s14 }
   0x4   :  { %p2064_p0 = scmp.ne.s32.totalorder %s44_s14, %s2063_s17  ;;  %p2069_p2 = scmp.lt.s32.totalorder %s2063_s17, %s2063_s17 }
   0x6   :  { %p2070_p3 = por %p2069_p2, %p2068_p1 }
   0x8   :  { %p2071_p4 = pnand %p2070_p3, %p2064_p0 }
   0xa   :  { %2074 = shalt.err (!%p2071_p4)
}
   0xb   :  { %s2121_s18 = smov 64   ;;  %s2122_s19 = smov 4  }
   0xc   :  { %49 = dma.hbm_to_vmem [thread:$0]  %s2336_s5, 1024, %s44_s14, [#allocation5], %s2121_s18, %s2121_s18, %s2122_s19  }
   0xd   :  { %s2083_s22 = scalar_lea.vmem %s26_s16, 8192  ;;  %p2088_p6 = scmp.lt.s32.totalorder %s26_s16, %s26_s16 }
   0xe   :  { %p2084_p5 = scmp.ne.s32.totalorder %s26_s16, %s2083_s22  ;;  %p2089_p7 = scmp.lt.s32.totalorder %s2083_s22, %s2083_s22 }
  0x10   :  { %p2090_p8 = por %p2089_p7, %p2088_p6 }
  0x12   :  { %p2091_p9 = pnand %p2090_p8, %p2084_p5 }
  0x14   :  { %2094 = shalt.err (!%p2091_p9)
}
  0x15   :  { %31 = dma.hbm_to_vmem [thread:$0]  %s2332_s1, 8192, %s26_s16, [#allocation3], %s2121_s18, %s2121_s18, %s2122_s19  }
  0x16   :  { %s2123_s25 = smov [#allocation6]  }
  0x17   :  { %s57_s26 = sshll.u32 %s2123_s25, 4  ;;  %s58_s26 = int_to_ptr.vmem [resolvable:$true] %s57_s26 }
  0x18   :  { %s2103_s27 = scalar_lea.vmem %s58_s26, 8192  ;;  %p2108_p11 = scmp.lt.s32.totalorder %s58_s26, %s58_s26 }
  0x19   :  { %p2104_p10 = scmp.ne.s32.totalorder %s58_s26, %s2103_s27  ;;  %p2109_p12 = scmp.lt.s32.totalorder %s2103_s27, %s2103_s27 }
  0x1b   :  { %p2110_p13 = por %p2109_p12, %p2108_p11 }
  0x1d   :  { %p2111_p0 = pnand %p2110_p13, %p2104_p10 }
  0x1f   :  { %2114 = shalt.err (!%p2111_p0)
}
  0x20   :  { %s2124_s5 = smov 512   ;;  %s2125_s28 = smov 32  }
  0x21   :  { %63 = dma.hbm_to_vmem [thread:$0]  %s2338_s7, 8192, %s58_s26, [#allocation5], %s2124_s5, %s2124_s5, %s2125_s28  }
  0x22   :  { %2115 = dma.done.wait [#allocation3], 8192  }
  0x23   :  { %2116 = vsyncadd [#allocation3], 4294959104 }
  0x24   :  { %2117 = dma.done.wait [#allocation5], 9216  }
  0x25   :  { %2118 = vsyncadd [#allocation5], 4294958080  ;;  %v1975_v0 = vld [vmem:[#allocation2 + $0x78] sm:$0xff]   ;;  %v1979_v4 = vld [vmem:[#allocation2 + $0x70] sm:$0xff]   ;;  %vm2127_vm0 = vmmov 0  }
  0x26   :  { %v1976_v1 = vld [vmem:[#allocation2 + $0xf8] sm:$0xff]   ;;  %1819 = vmatprep.subr.bf16.mxu0 %v1975_v0  ;;  %v1980_v5 = vld [vmem:[#allocation2 + $0xf0] sm:$0xff]   ;;  %v1983_v8 = vld [vmem:[#allocation2 + $0x68] sm:$0xff]  }
  0x27   :  { %v1977_v2 = vld [vmem:[#allocation2 + $0x38] sm:$0xff]   ;;  %1841 = vmatprep.subr.bf16.mxu1 %v1976_v1  ;;  %v1981_v6 = vld [vmem:[#allocation2 + $0x30] sm:$0xff]   ;;  %v1984_v9 = vld [vmem:[#allocation2 + $0xe8] sm:$0xff]  }
  0x28   :  { %v1978_v3 = vld [vmem:[#allocation2 + $0xb8] sm:$0xff]   ;;  %1820 = vmatpush3.bf16.msra.mxu0 %v1977_v2  ;;  %v1982_v7 = vld [vmem:[#allocation2 + $0xb0] sm:$0xff]   ;;  %v1985_v10 = vld [vmem:[#allocation2 + $0x28] sm:$0xff]  }
  0x29   :  { %1842 = vmatpush3.bf16.msra.mxu1 %v1978_v3  ;;  %1821 = vmatprep.subr.bf16.mxu0 %v1979_v4  ;;  %v1986_v11 = vld [vmem:[#allocation2 + $0xa8] sm:$0xff]   ;;  %v1987_v12 = vld [vmem:[#allocation2 + $0x60] sm:$0xff]   ;;  %v1991_v16 = vld [vmem:[#allocation2 + $0x58] sm:$0xff]  }
  0x2a   :  { %1843 = vmatprep.subr.bf16.mxu1 %v1980_v5  ;;  %v1988_v13 = vld [vmem:[#allocation2 + $0xe0] sm:$0xff]   ;;  %v1992_v17 = vld [vmem:[#allocation2 + $0xd8] sm:$0xff]   ;;  %v1995_v20 = vld [vmem:[#allocation2 + $0x50] sm:$0xff]  }
  0x2b   :  { %v1989_v14 = vld [vmem:[#allocation2 + $0x20] sm:$0xff]   ;;  %v1993_v18 = vld [vmem:[#allocation2 + $0x18] sm:$0xff]   ;;  %v1996_v21 = vld [vmem:[#allocation2 + $0xd0] sm:$0xff]  }
  0x2c   :  { %1822 = vmatpush3.bf16.msra.mxu0 %v1981_v6  ;;  %v1990_v15 = vld [vmem:[#allocation2 + $0xa0] sm:$0xff]   ;;  %v1994_v19 = vld [vmem:[#allocation2 + $0x98] sm:$0xff]   ;;  %v1997_v22 = vld [vmem:[#allocation2 + $0x10] sm:$0xff]  }
  0x2d   :  { %1844 = vmatpush3.bf16.msra.mxu1 %v1982_v7  ;;  %1823 = vmatprep.subr.bf16.mxu0 %v1983_v8  ;;  %v1998_v23 = vld [vmem:[#allocation2 + $0x90] sm:$0xff]   ;;  %v1999_v24 = vld [vmem:[#allocation2 + $0x48] sm:$0xff]   ;;  %v2003_v28 = vld [vmem:[#allocation2 + $0x40] sm:$0xff]  }
  0x2e   :  { %1845 = vmatprep.subr.bf16.mxu1 %v1984_v9  ;;  %v2000_v25 = vld [vmem:[#allocation2 + $0xc8] sm:$0xff]   ;;  %v2004_v29 = vld [vmem:[#allocation2 + $0xc0] sm:$0xff]   ;;  %v2007_v40 = vld [vmem:[#allocation2 + $0x178] sm:$0xff]  }
  0x2f   :  { %v2001_v26 = vld [vmem:[#allocation2 + $0x8] sm:$0xff]   ;;  %v2005_v30 = vld [vmem:[#allocation2] sm:$0xff]   ;;  %v2008_v41 = vld [vmem:[#allocation2 + $0x1f8] sm:$0xff]  }
  0x30   :  { %1824 = vmatpush3.bf16.msra.mxu0 %v1985_v10  ;;  %v2002_v27 = vld [vmem:[#allocation2 + $0x88] sm:$0xff]   ;;  %v2006_v31 = vld [vmem:[#allocation2 + $0x80] sm:$0xff]   ;;  %v2009_v42 = vld [vmem:[#allocation2 + $0x138] sm:$0xff]  }
  0x31   :  { %1846 = vmatpush3.bf16.msra.mxu1 %v1986_v11  ;;  %1825 = vmatprep.subr.bf16.mxu0 %v1987_v12  ;;  %v76_v32 = vld [vmem:[%s2331_s0] sm:$0xff]  ;;  %v77_v34 = vld [vmem:[%s2331_s0 + $0x8] sm:$0xff]  ;;  %v2010_v43 = vld [vmem:[#allocation2 + $0x1b8] sm:$0xff]  }
  0x32   :  { %1847 = vmatprep.subr.bf16.mxu1 %v1988_v13  ;;  %v80_v33 = vld [vmem:[%s2331_s0 + $0x20] sm:$0xff]  ;;  %v81_v37 = vld [vmem:[%s2331_s0 + $0x28] sm:$0xff]  ;;  %v2011_v44 = vld [vmem:[#allocation2 + $0x170] sm:$0xff]  }
  0x33   :  { %v1665_v35 = vcombine.low %v76_v32, %v80_v33  ;;  %v1666_v36 = vcombine.high %v76_v32, %v80_v33  ;;  %v1667_v38 = vcombine.low %v77_v34, %v81_v37  ;;  %v1668_v39 = vcombine.high %v77_v34, %v81_v37  ;;  %v2012_v45 = vld [vmem:[#allocation2 + $0x1f0] sm:$0xff]   ;;  %v2015_v48 = vld [vmem:[#allocation2 + $0x168] sm:$0xff]   ;;  %v2019_v52 = vld [vmem:[#allocation2 + $0x160] sm:$0xff]  }
  0x34   :  { %1826 = vmatpush3.bf16.msra.mxu0 %v1989_v14  ;;  %v2013_v46 = vld [vmem:[#allocation2 + $0x130] sm:$0xff]   ;;  %v2016_v49 = vld [vmem:[#allocation2 + $0x1e8] sm:$0xff]   ;;  %v2020_v53 = vld [vmem:[#allocation2 + $0x1e0] sm:$0xff]  }
  0x35   :  { %1848 = vmatpush3.bf16.msra.mxu1 %v1990_v15  ;;  %1827 = vmatprep.subr.bf16.mxu0 %v1991_v16  ;;  %v2014_v47 = vld [vmem:[#allocation2 + $0x1b0] sm:$0xff]   ;;  %v2017_v50 = vld [vmem:[#allocation2 + $0x128] sm:$0xff]   ;;  %v2021_v54 = vld [vmem:[#allocation2 + $0x120] sm:$0xff]  }
  0x36   :  { %1849 = vmatprep.subr.bf16.mxu1 %v1992_v17  ;;  %675 = vmatprep.mubr.bf16.mxu0 %v1666_v36  ;;  %v2018_v51 = vld [vmem:[#allocation2 + $0x1a8] sm:$0xff]   ;;  %v2022_v55 = vld [vmem:[#allocation2 + $0x1a0] sm:$0xff]   ;;  %v2023_v56 = vld [vmem:[#allocation2 + $0x158] sm:$0xff]   ;;  %v2126_v17 = vmov 0.0  }
  0x37   :  { %716 = vmatprep.mubr.bf16.mxu1 %v1668_v39  ;;  %v2024_v57 = vld [vmem:[#allocation2 + $0x1d8] sm:$0xff]   ;;  %v2027_v60 = vld [vmem:[#allocation2 + $0x150] sm:$0xff]   ;;  %v2031_v0 = vld [vmem:[#allocation2 + $0x148] sm:$0xff]  }
  0x38   :  { %1828 = vmatpush3.bf16.msra.mxu0 %v1993_v18  ;;  %v2025_v58 = vld [vmem:[#allocation2 + $0x118] sm:$0xff]   ;;  %v2028_v61 = vld [vmem:[#allocation2 + $0x1d0] sm:$0xff]   ;;  %v2032_v1 = vld [vmem:[#allocation2 + $0x1c8] sm:$0xff]  }
  0x39   :  { %1850 = vmatpush3.bf16.msra.mxu1 %v1994_v19  ;;  %1829 = vmatprep.subr.bf16.mxu0 %v1995_v20  ;;  %v2026_v59 = vld [vmem:[#allocation2 + $0x198] sm:$0xff]   ;;  %v2029_v62 = vld [vmem:[#allocation2 + $0x110] sm:$0xff]   ;;  %v2033_v2 = vld [vmem:[#allocation2 + $0x108] sm:$0xff]  }
  0x3a   :  { %1851 = vmatprep.subr.bf16.mxu1 %v1996_v21  ;;  %v2030_v63 = vld [vmem:[#allocation2 + $0x190] sm:$0xff]   ;;  %v2034_v3 = vld [vmem:[#allocation2 + $0x188] sm:$0xff]   ;;  %v2035_v4 = vld [vmem:[#allocation2 + $0x140] sm:$0xff]  }
  0x3b   :  { %v2036_v5 = vld [vmem:[#allocation2 + $0x1c0] sm:$0xff]   ;;  %v78_v8 = vld [vmem:[%s2331_s0 + $0x10] sm:$0xff]  ;;  %v79_v12 = vld [vmem:[%s2331_s0 + $0x18] sm:$0xff] }
  0x3c   :  { %1830 = vmatpush3.bf16.msra.mxu0 %v1997_v22  ;;  %v2037_v6 = vld [vmem:[#allocation2 + $0x100] sm:$0xff]   ;;  %v82_v9 = vld [vmem:[%s2331_s0 + $0x30] sm:$0xff]  ;;  %v83_v13 = vld [vmem:[%s2331_s0 + $0x38] sm:$0xff] }
  0x3d   :  { %1852 = vmatpush3.bf16.msra.mxu1 %v1998_v23  ;;  %1831 = vmatprep.subr.bf16.mxu0 %v1999_v24  ;;  %v2038_v7 = vld [vmem:[#allocation2 + $0x180] sm:$0xff]   ;;  %v1669_v10 = vcombine.low %v78_v8, %v82_v9  ;;  %v1670_v11 = vcombine.high %v78_v8, %v82_v9  ;;  %v1671_v14 = vcombine.low %v79_v12, %v83_v13  ;;  %v2039_v16 = vld [vmem:[%s2334_s3 + $0x38] sm:$0xff]   ;;  %v2040_v18 = vld [vmem:[%s2334_s3 + $0x30] sm:$0xff]  }
  0x3e   :  { %1853 = vmatprep.subr.bf16.mxu1 %v2000_v25  ;;  %v1672_v15 = vcombine.high %v79_v12, %v83_v13  ;;  %v2041_v19 = vld [vmem:[%s2334_s3 + $0x28] sm:$0xff]   ;;  %v2042_v20 = vld [vmem:[%s2334_s3 + $0x20] sm:$0xff]   ;;  %v2043_v21 = vld [vmem:[%s2334_s3 + $0x18] sm:$0xff]  }
  0x3f   :  { %v2044_v22 = vld [vmem:[%s2334_s3 + $0x10] sm:$0xff]   ;;  %v2045_v23 = vld [vmem:[%s2334_s3 + $0x8] sm:$0xff]   ;;  %v2046_v24 = vld [vmem:[%s2334_s3] sm:$0xff]  }
  0x40   :  { %1832 = vmatpush3.bf16.msra.mxu0 %v2001_v26  ;;  %v2047_v25 = vld [vmem:[#allocation4 + $0x38] sm:$0xff]   ;;  %v2048_v26 = vld [vmem:[#allocation4 + $0x30] sm:$0xff]   ;;  %v1092_v12 = vld [vmem:[#allocation6 + $0x1a0] sm:$0xff] }
  0x41   :  { %1854 = vmatpush3.bf16.msra.mxu1 %v2002_v27  ;;  %1833 = vmatprep.subr.bf16.mxu0 %v2003_v28  ;;  %v2049_v27 = vld [vmem:[#allocation4 + $0x28] sm:$0xff]   ;;  %v2050_v28 = vld [vmem:[#allocation4 + $0x20] sm:$0xff]  }
  0x42   :  { %1855 = vmatprep.subr.bf16.mxu1 %v2004_v29  ;;  %v2051_v29 = vld [vmem:[#allocation4 + $0x18] sm:$0xff]  }
  0x44   :  { %1834 = vmatpush3.bf16.msra.mxu0 %v2005_v30  ;;  %v2052_v30 = vld [vmem:[#allocation4 + $0x10] sm:$0xff]  }
  0x45   :  { %1856 = vmatpush3.bf16.msra.mxu1 %v2006_v31  ;;  %1863 = vmatprep.subr.bf16.mxu0 %v2007_v40 }
  0x46   :  { %1885 = vmatprep.subr.bf16.mxu1 %v2008_v41 }
  0x47   :  { %676 = vmatmul.mubr.bf16.vlgmr.msra.gmra.mxu0 %v1665_v35 }
  0x48   :  { %717 = vmatmul.mubr.bf16.vlgmr.msra.gmra.mxu1 %v1667_v38  ;;  %1864 = vmatpush3.bf16.msra.mxu0 %v2009_v42  ;;  %v1664_v38 = vld [vmem:[%s2333_s2] ss:$0 sm:$0xff] }
  0x49   :  { %1886 = vmatpush3.bf16.msra.mxu1 %v2010_v43  ;;  %1865 = vmatprep.subr.bf16.mxu0 %v2011_v44 }
  0x4a   :  { %1887 = vmatprep.subr.bf16.mxu1 %v2012_v45  ;;  %757 = vmatprep.mubr.bf16.mxu0 %v1670_v11  ;;  %v1088_v11 = vld [vmem:[#allocation6 + $0x180] sm:$0xff] }
  0x4b   :  { %798 = vmatprep.mubr.bf16.mxu1 %v1672_v15  ;;  %v1804_v15 = vcombine.high %v1088_v11, %v1092_v12 }
  0x4c   :  { %1866 = vmatpush3.bf16.msra.mxu0 %v2013_v46 }
  0x4d   :  { %1888 = vmatpush3.bf16.msra.mxu1 %v2014_v47  ;;  %1867 = vmatprep.subr.bf16.mxu0 %v2015_v48 }
  0x4e   :  { %1889 = vmatprep.subr.bf16.mxu1 %v2016_v49 }
  0x50   :  { %1868 = vmatpush3.bf16.msra.mxu0 %v2017_v50 }
  0x51   :  { %1890 = vmatpush3.bf16.msra.mxu1 %v2018_v51  ;;  %1869 = vmatprep.subr.bf16.mxu0 %v2019_v52 }
  0x52   :  { %1891 = vmatprep.subr.bf16.mxu1 %v2020_v53 }
  0x54   :  { %1870 = vmatpush3.bf16.msra.mxu0 %v2021_v54 }
  0x55   :  { %1892 = vmatpush3.bf16.msra.mxu1 %v2022_v55  ;;  %1871 = vmatprep.subr.bf16.mxu0 %v2023_v56 }
  0x56   :  { %1893 = vmatprep.subr.bf16.mxu1 %v2024_v57 }
  0x58   :  { %1872 = vmatpush3.bf16.msra.mxu0 %v2025_v58 }
  0x59   :  { %1894 = vmatpush3.bf16.msra.mxu1 %v2026_v59  ;;  %1873 = vmatprep.subr.bf16.mxu0 %v2027_v60 }
  0x5a   :  { %1895 = vmatprep.subr.bf16.mxu1 %v2028_v61 }
  0x5c   :  { %1874 = vmatpush3.bf16.msra.mxu0 %v2029_v62 }
  0x5d   :  { %1896 = vmatpush3.bf16.msra.mxu1 %v2030_v63  ;;  %1875 = vmatprep.subr.bf16.mxu0 %v2031_v0 }
  0x5e   :  { %1897 = vmatprep.subr.bf16.mxu1 %v2032_v1 }
  0x60   :  { %1876 = vmatpush3.bf16.msra.mxu0 %v2033_v2 }
  0x61   :  { %1898 = vmatpush3.bf16.msra.mxu1 %v2034_v3  ;;  %1877 = vmatprep.subr.bf16.mxu0 %v2035_v4  ;;  %v2053_v3 = vld [vmem:[#allocation4 + $0x8] sm:$0xff]   ;;  %v2054_v4 = vld [vmem:[#allocation4] sm:$0xff]  }
  0x62   :  { %1899 = vmatprep.subr.bf16.mxu1 %v2036_v5  ;;  %v1096_v5 = vld [vmem:[#allocation6 + $0x1c0] sm:$0xff] }
  0x64   :  { %1878 = vmatpush3.bf16.msra.mxu0 %v2037_v6  ;;  %v1100_v6 = vld [vmem:[#allocation6 + $0x1e0] sm:$0xff] }
  0x65   :  { %1900 = vmatpush3.bf16.msra.mxu1 %v2038_v7  ;;  %1925 = vmatprep.subr.bf16.mxu0 %v2126_v17  ;;  %v1097_v7 = vld [vmem:[#allocation6 + $0x1c8] sm:$0xff]  ;;  %v1811_v8 = vcombine.low %v1096_v5, %v1100_v6  ;;  %v1812_v9 = vcombine.high %v1096_v5, %v1100_v6  ;;  %v1040_v5 = vld [vmem:[#allocation6] sm:$0xff] }
  0x66   :  { %1945 = vmatprep.subr.bf16.mxu1 %v2126_v17  ;;  %v1044_v6 = vld [vmem:[#allocation6 + $0x20] sm:$0xff] }
  0x67   :  { %758 = vmatmul.mubr.bf16.vlgmr.msra.gmra.mxu0 %v1669_v10  ;;  %v1101_v10 = vld [vmem:[#allocation6 + $0x1e8] sm:$0xff] }
  0x68   :  { %799 = vmatmul.mubr.bf16.vlgmr.msra.gmra.mxu1 %v1671_v14  ;;  %1926 = vmatpush3.bf16.msra.mxu0 %v2039_v16  ;;  %v1813_v13 = vcombine.low %v1097_v7, %v1101_v10  ;;  %v1814_v14 = vcombine.high %v1097_v7, %v1101_v10  ;;  %v1803_v16 = vcombine.low %v1088_v11, %v1092_v12  ;;  %v1041_v7 = vld [vmem:[#allocation6 + $0x8] sm:$0xff] }
  0x69   :  { %1927 = vmatprep.subr.bf16.mxu0 %v2126_v17  ;;  %1941 = vmatprep.mubr.msk.bf16.mxu0 %vm2127_vm0, %v2126_v17  ;;  %v1755_v10 = vcombine.low %v1040_v5, %v1044_v6 }
  0x6a   :  { %1961 = vmatprep.mubr.msk.bf16.mxu1 %vm2127_vm0, %v2126_v17  ;;  %1946 = vmatpush3.bf16.msra.mxu1 %v2047_v25  ;;  %v1064_v25 = vld [vmem:[#allocation6 + $0xc0] sm:$0xff] }
  0x6b   :  { %1947 = vmatprep.subr.bf16.mxu1 %v2126_v17 }
  0x6c   :  { %1928 = vmatpush3.bf16.msra.mxu0 %v2040_v18  ;;  %v1080_v18 = vld [vmem:[#allocation6 + $0x140] sm:$0xff] }
  0x6d   :  { %1929 = vmatprep.subr.bf16.mxu0 %v2126_v17 }
  0x6e   :  { %1948 = vmatpush3.bf16.msra.mxu1 %v2048_v26  ;;  %v1068_v26 = vld [vmem:[#allocation6 + $0xe0] sm:$0xff] }
  0x6f   :  { %1949 = vmatprep.subr.bf16.mxu1 %v2126_v17 }
  0x70   :  { %1930 = vmatpush3.bf16.msra.mxu0 %v2041_v19 }
  0x71   :  { %1931 = vmatprep.subr.bf16.mxu0 %v2126_v17 }
  0x72   :  { %1950 = vmatpush3.bf16.msra.mxu1 %v2049_v27  ;;  %v1780_v27 = vcombine.high %v1064_v25, %v1068_v26 }
  0x73   :  { %1951 = vmatprep.subr.bf16.mxu1 %v2126_v17 }
  0x74   :  { %1932 = vmatpush3.bf16.msra.mxu0 %v2042_v20 }
  0x75   :  { %1933 = vmatprep.subr.bf16.mxu0 %v2126_v17 }
  0x76   :  { %1952 = vmatpush3.bf16.msra.mxu1 %v2050_v28  ;;  %v1779_v28 = vcombine.low %v1064_v25, %v1068_v26 }
  0x77   :  { %1953 = vmatprep.subr.bf16.mxu1 %v2126_v17 }
  0x78   :  { %1934 = vmatpush3.bf16.msra.mxu0 %v2043_v21  ;;  %v1072_v21 = vld [vmem:[#allocation6 + $0x100] sm:$0xff] }
  0x79   :  { %1935 = vmatprep.subr.bf16.mxu0 %v2126_v17 }
  0x7a   :  { %1954 = vmatpush3.bf16.msra.mxu1 %v2051_v29  ;;  %v1056_v29 = vld [vmem:[#allocation6 + $0x80] sm:$0xff] }
  0x7b   :  { %1955 = vmatprep.subr.bf16.mxu1 %v2126_v17 }
  0x7c   :  { %1936 = vmatpush3.bf16.msra.mxu0 %v2044_v22  ;;  %v1076_v22 = vld [vmem:[#allocation6 + $0x120] sm:$0xff] }
  0x7d   :  { %1937 = vmatprep.subr.bf16.mxu0 %v2126_v17 }
  0x7e   :  { %1956 = vmatpush3.bf16.msra.mxu1 %v2052_v30  ;;  %v1060_v30 = vld [vmem:[#allocation6 + $0xa0] sm:$0xff] }
  0x7f   :  { %1957 = vmatprep.subr.bf16.mxu1 %v2126_v17 }
  0x80   :  { %1938 = vmatpush3.bf16.msra.mxu0 %v2045_v23  ;;  %v1788_v23 = vcombine.high %v1072_v21, %v1076_v22 }
  0x81   :  { %1939 = vmatprep.subr.bf16.mxu0 %v2126_v17 }
  0x82   :  { %1958 = vmatpush3.bf16.msra.mxu1 %v2053_v3 }
  0x83   :  { %1959 = vmatprep.subr.bf16.mxu1 %v2126_v17  ;;  %v1084_v17 = vld [vmem:[#allocation6 + $0x160] sm:$0xff] }
  0x84   :  { %1940 = vmatpush3.bf16.msra.mxu0 %v2046_v24  ;;  %v1796_v19 = vcombine.high %v1080_v18, %v1084_v17  ;;  %v1795_v20 = vcombine.low %v1080_v18, %v1084_v17  ;;  %v1787_v24 = vcombine.low %v1072_v21, %v1076_v22  ;;  %v1103_v17 = vld [vmem:[#allocation6 + $0x1f8] sm:$0xff]  ;;  %v1746_v22 = vld [vmem:[%s2337_s6] ss:$0 sm:$0xff] }
  0x85   :  { %1466 = vmatprep.subr.bf16.mxu0 %v1812_v9  ;;  %v1045_v9 = vld [vmem:[#allocation6 + $0x28] sm:$0xff] }
  0x86   :  { %1960 = vmatpush3.bf16.msra.mxu1 %v2054_v4  ;;  %v1757_v11 = vcombine.low %v1041_v7, %v1045_v9  ;;  %v1758_v12 = vcombine.high %v1041_v7, %v1045_v9  ;;  %v1054_v7 = vld [vmem:[#allocation6 + $0x70] sm:$0xff]  ;;  %v1055_v9 = vld [vmem:[#allocation6 + $0x78] sm:$0xff] }
  0x87   :  { %1509 = vmatprep.subr.bf16.mxu1 %v1814_v14  ;;  %v1102_v14 = vld [vmem:[#allocation6 + $0x1f0] sm:$0xff] }
 0x107   :  { %v1835_v31 = vpop.f32.mrf.mxu0 }
 0x108   :  { %v1857_v32 = vpop.f32.mrf.mxu1 }
 0x109   :  { %v1836_v33 = vpop.f32.mrf.mxu0 }
 0x10a   :  { %v1858_v34 = vpop.f32.mrf.mxu1  ;;  %v1837_v36 = vadd.f32 %v1836_v33, %v1835_v31  ;;  %v1772_v31 = vcombine.high %v1056_v29, %v1060_v30  ;;  %v1737_v33 = vld [vmem:[%s2335_s4] ss:$0 sm:$0xff] }
 0x10b   :  { %v1838_v35 = vpop.f32.mrf.mxu0  ;;  %v1859_v41 = vadd.f32 %v1858_v34, %v1857_v32  ;;  %v1771_v32 = vcombine.low %v1056_v29, %v1060_v30  ;;  %v1094_v30 = vld [vmem:[#allocation6 + $0x1b0] sm:$0xff] }
 0x10c   :  { %v1860_v37 = vpop.f32.mrf.mxu1  ;;  %v678_v40 = vadd.f32 %v1837_v36, %v1664_v38 }
 0x10d   :  { %v1839_v39 = vpop.f32.mrf.mxu0 }
 0x10e   :  { %v1840_v42 = vadd.f32 %v1839_v39, %v1838_v35  ;;  %v1861_v43 = vpop.f32.mrf.mxu1  ;;  %v719_v47 = vadd.f32 %v1859_v41, %v678_v40  ;;  %v1093_v39 = vld [vmem:[#allocation6 + $0x1a8] sm:$0xff] }
 0x10f   :  { %v1862_v52 = vadd.f32 %v1861_v43, %v1860_v37 }
 0x110   :  { %v681_v48 = vadd.f32 %v1840_v42, %v1664_v38  ;;  %v1089_v38 = vld [vmem:[#allocation6 + $0x188] sm:$0xff] }
 0x111   :  { %v1806_v43 = vcombine.high %v1089_v38, %v1093_v39 }
 0x112   :  { %v722_v56 = vadd.f32 %v1862_v52, %v681_v48  ;;  %v1073_v48 = vld [vmem:[#allocation6 + $0x108] sm:$0xff] }
 0x113   :  { %v1065_v52 = vld [vmem:[#allocation6 + $0xc8] sm:$0xff] }
 0x127   :  { %v1879_v44 = vpop.f32.mrf.mxu0 }
 0x128   :  { %v1901_v45 = vpop.f32.mrf.mxu1 }
 0x129   :  { %v1880_v46 = vpop.f32.mrf.mxu0 }
 0x12a   :  { %v1881_v49 = vadd.f32 %v1880_v46, %v1879_v44  ;;  %v1902_v50 = vpop.f32.mrf.mxu1  ;;  %v1081_v44 = vld [vmem:[#allocation6 + $0x148] sm:$0xff]  ;;  %v1805_v46 = vcombine.low %v1089_v38, %v1093_v39  ;;  %v1082_v38 = vld [vmem:[#allocation6 + $0x150] sm:$0xff] }
 0x12b   :  { %v1882_v51 = vpop.f32.mrf.mxu0  ;;  %v1903_v57 = vadd.f32 %v1902_v50, %v1901_v45  ;;  %v1085_v45 = vld [vmem:[#allocation6 + $0x168] sm:$0xff]  ;;  %v1086_v39 = vld [vmem:[#allocation6 + $0x170] sm:$0xff] }
 0x12c   :  { %v760_v53 = vadd.f32 %v1881_v49, %v719_v47  ;;  %v1904_v54 = vpop.f32.mrf.mxu1  ;;  %v1798_v47 = vcombine.high %v1081_v44, %v1085_v45  ;;  %v1077_v49 = vld [vmem:[#allocation6 + $0x128] sm:$0xff]  ;;  %v1797_v50 = vcombine.low %v1081_v44, %v1085_v45  ;;  %v1800_v44 = vcombine.high %v1082_v38, %v1086_v39 }
 0x12d   :  { %v1883_v55 = vpop.f32.mrf.mxu0 }
 0x12e   :  { %v1884_v58 = vadd.f32 %v1883_v55, %v1882_v51  ;;  %v1905_v59 = vpop.f32.mrf.mxu1  ;;  %v801_v60 = vadd.f32 %v1903_v57, %v760_v53  ;;  %v1790_v51 = vcombine.high %v1073_v48, %v1077_v49  ;;  %v1069_v53 = vld [vmem:[#allocation6 + $0xe8] sm:$0xff] }
 0x12f   :  { %v1906_v62 = vadd.f32 %v1905_v59, %v1904_v54  ;;  %v1789_v54 = vcombine.low %v1073_v48, %v1077_v49  ;;  %v1782_v55 = vcombine.high %v1065_v52, %v1069_v53  ;;  %v1061_v57 = vld [vmem:[#allocation6 + $0xa8] sm:$0xff]  ;;  %v1075_v48 = vld [vmem:[#allocation6 + $0x118] sm:$0xff] }
 0x130   :  { %v763_v61 = vadd.f32 %v1884_v58, %v722_v56  ;;  %v807_v0 = vmax.f32 %v801_v60, 0.0  ;;  %v1057_v56 = vld [vmem:[#allocation6 + $0x88] sm:$0xff]  ;;  %v1781_v58 = vcombine.low %v1065_v52, %v1069_v53  ;;  %v1079_v49 = vld [vmem:[#allocation6 + $0x138] sm:$0xff] }
 0x131   :  { %v1774_v59 = vcombine.high %v1057_v56, %v1061_v57  ;;  %v1773_v60 = vcombine.low %v1057_v56, %v1061_v57  ;;  %v1794_v53 = vcombine.high %v1075_v48, %v1079_v49  ;;  %v1067_v56 = vld [vmem:[#allocation6 + $0xd8] sm:$0xff] }
 0x132   :  { %v804_v63 = vadd.f32 %v1906_v62, %v763_v61  ;;  %v1048_v61 = vld [vmem:[#allocation6 + $0x40] sm:$0xff]  ;;  %v1071_v57 = vld [vmem:[#allocation6 + $0xf8] sm:$0xff] }
 0x133   :  { %v1052_v62 = vld [vmem:[#allocation6 + $0x60] sm:$0xff] }
 0x134   :  { %v808_v1 = vmax.f32 %v804_v63, 0.0  ;;  %v1049_v63 = vld [vmem:[#allocation6 + $0x48] sm:$0xff] }
 0x136   :  { %v809_v2 = vpack.c.bf16 %v808_v1, %v807_v0  ;;  %v1764_v0 = vcombine.high %v1048_v61, %v1052_v62  ;;  %v1053_v1 = vld [vmem:[#allocation6 + $0x68] sm:$0xff] }
 0x137   :  { %v1765_v3 = vcombine.low %v1049_v63, %v1053_v1  ;;  %v1766_v4 = vcombine.high %v1049_v63, %v1053_v1  ;;  %v1062_v63 = vld [vmem:[#allocation6 + $0xb0] sm:$0xff]  ;;  %v1063_v1 = vld [vmem:[#allocation6 + $0xb8] sm:$0xff] }
 0x138   :  { %1942 = vmatmul.mubr.bf16.vlgmr.msra.gmra.mxu0 %v809_v2  ;;  %v1763_v2 = vcombine.low %v1048_v61, %v1052_v62  ;;  %v1786_v61 = vcombine.high %v1067_v56, %v1071_v57  ;;  %v1058_v62 = vld [vmem:[#allocation6 + $0x90] sm:$0xff] }
 0x139   :  { %1467 = vmatpush1.bf16.msra.mxu0 %v1811_v8  ;;  %v1756_v8 = vcombine.high %v1040_v5, %v1044_v6  ;;  %v1050_v6 = vld [vmem:[#allocation6 + $0x50] sm:$0xff] }
 0x13a   :  { %1468 = vmatprep.subr.bf16.mxu0 %v1804_v15  ;;  %v1099_v15 = vld [vmem:[#allocation6 + $0x1d8] sm:$0xff] }
 0x13b   :  { %v1818_v21 = vcombine.high %v1099_v15, %v1103_v17 }
 0x13d   :  { %1469 = vmatpush1.bf16.msra.mxu0 %v1803_v16 }
 0x13e   :  { %1470 = vmatprep.subr.bf16.mxu0 %v1796_v19  ;;  %v2128_v19 = vmov 0  }
 0x13f   :  { %1498 = vmatprep.mubr.bf16.mxu0 %v2128_v19 }
 0x141   :  { %1471 = vmatpush1.bf16.msra.mxu0 %v1795_v20  ;;  %v1817_v20 = vcombine.low %v1099_v15, %v1103_v17  ;;  %v1046_v15 = vld [vmem:[#allocation6 + $0x30] sm:$0xff]  ;;  %v1767_v17 = vcombine.low %v1050_v6, %v1054_v7 }
 0x142   :  { %1472 = vmatprep.subr.bf16.mxu0 %v1788_v23 }
 0x145   :  { %1473 = vmatpush1.bf16.msra.mxu0 %v1787_v24 }
 0x146   :  { %1474 = vmatprep.subr.bf16.mxu0 %v1780_v27 }
 0x149   :  { %1475 = vmatpush1.bf16.msra.mxu0 %v1779_v28  ;;  %v1090_v28 = vld [vmem:[#allocation6 + $0x190] sm:$0xff] }
 0x14a   :  { %1476 = vmatprep.subr.bf16.mxu0 %v1772_v31  ;;  %v1091_v31 = vld [vmem:[#allocation6 + $0x198] sm:$0xff] }
 0x14d   :  { %1477 = vmatpush1.bf16.msra.mxu0 %v1771_v32  ;;  %v1095_v32 = vld [vmem:[#allocation6 + $0x1b8] sm:$0xff] }
 0x14e   :  { %1478 = vmatprep.subr.bf16.mxu0 %v1764_v0  ;;  %v1059_v0 = vld [vmem:[#allocation6 + $0x98] sm:$0xff] }
 0x14f   :  { %v1778_v5 = vcombine.high %v1059_v0, %v1063_v1 }
 0x151   :  { %1479 = vmatpush1.bf16.msra.mxu0 %v1763_v2 }
 0x152   :  { %1480 = vmatprep.subr.bf16.mxu0 %v1756_v8  ;;  %v1051_v8 = vld [vmem:[#allocation6 + $0x58] sm:$0xff] }
 0x155   :  { %1481 = vmatpush1.bf16.msra.mxu0 %v1755_v10  ;;  %v1775_v10 = vcombine.low %v1058_v62, %v1062_v63 }
 0x1f8   :  { %v915_v34 = vpop.f32.mrf.mxu0 }
 0x1f9   :  { %v916_v35 = vadd.f32 %v1737_v33, %v915_v34 }
 0x1fa   :  { %v1943_v36 = vpop.f32.mrf.mxu0 }
 0x1fb   :  { %922 = vst [vmem:[%s2341_s10] sm:$0xff] %v916_v35  ;;  %v1808_v36 = vcombine.high %v1090_v28, %v1094_v30 }
 0x1fc   :  { %v918_v37 = vpop.f32.mrf.mxu0 }
 0x1fd   :  { %v919_v40 = vadd.f32 %v1737_v33, %v918_v37  ;;  %v1810_v37 = vcombine.high %v1091_v31, %v1095_v32 }
 0x1fe   :  { %v1944_v41 = vpop.f32.mrf.mxu0 }
 0x1ff   :  { %923 = vst [vmem:[%s2341_s10 + $0x8] sm:$0xff] %v919_v40  ;;  %v924_v42 = vpack.c.bf16 %v919_v40, %v916_v35  ;;  %v1083_v40 = vld [vmem:[#allocation6 + $0x158] sm:$0xff] }
 0x200   :  { %v1087_v41 = vld [vmem:[#allocation6 + $0x178] sm:$0xff] }
 0x201   :  { %1962 = vmatmul.mubr.bf16.vlgmr.msra.gmra.mxu1 %v924_v42  ;;  %v1807_v42 = vcombine.low %v1090_v28, %v1094_v30  ;;  %v1802_v45 = vcombine.high %v1083_v40, %v1087_v41  ;;  %v1104_v28 = vld [vmem:[%s2339_s8] sm:$0xff] }
 0x202   :  { %1510 = vmatpush1.bf16.msra.mxu1 %v1813_v13  ;;  %v1098_v13 = vld [vmem:[#allocation6 + $0x1d0] sm:$0xff]  ;;  %1541 = vmatprep.mubr.bf16.mxu1 %v2128_v19 }
 0x203   :  { %1511 = vmatprep.subr.bf16.mxu1 %v1806_v43  ;;  %v1815_v16 = vcombine.low %v1098_v13, %v1102_v14  ;;  %v1816_v18 = vcombine.high %v1098_v13, %v1102_v14  ;;  %v1809_v43 = vcombine.low %v1091_v31, %v1095_v32  ;;  %v1770_v13 = vcombine.high %v1051_v8, %v1055_v9  ;;  %v1042_v14 = vld [vmem:[#allocation6 + $0x10] sm:$0xff] }
 0x205   :  { %1552 = vmatprep.subr.bf16.mxu0 %v1816_v18  ;;  %v1047_v18 = vld [vmem:[#allocation6 + $0x38] sm:$0xff] }
 0x206   :  { %1512 = vmatpush1.bf16.msra.mxu1 %v1805_v46  ;;  %v1074_v46 = vld [vmem:[#allocation6 + $0x110] sm:$0xff] }
 0x207   :  { %1513 = vmatprep.subr.bf16.mxu1 %v1798_v47  ;;  %v1078_v47 = vld [vmem:[#allocation6 + $0x130] sm:$0xff] }
 0x208   :  { %v1792_v52 = vcombine.high %v1074_v46, %v1078_v47 }
 0x20a   :  { %1514 = vmatpush1.bf16.msra.mxu1 %v1797_v50  ;;  %v1799_v50 = vcombine.low %v1082_v38, %v1086_v39 }
 0x20b   :  { %1515 = vmatprep.subr.bf16.mxu1 %v1790_v51  ;;  %v1801_v51 = vcombine.low %v1083_v40, %v1087_v41 }
 0x20e   :  { %1516 = vmatpush1.bf16.msra.mxu1 %v1789_v54  ;;  %v1066_v54 = vld [vmem:[#allocation6 + $0xd0] sm:$0xff] }
 0x20f   :  { %1517 = vmatprep.subr.bf16.mxu1 %v1782_v55  ;;  %v1070_v55 = vld [vmem:[#allocation6 + $0xf0] sm:$0xff] }
 0x210   :  { %v1783_v2 = vcombine.low %v1066_v54, %v1070_v55 }
 0x212   :  { %1518 = vmatpush1.bf16.msra.mxu1 %v1781_v58  ;;  %v1791_v58 = vcombine.low %v1074_v46, %v1078_v47 }
 0x213   :  { %1519 = vmatprep.subr.bf16.mxu1 %v1774_v59  ;;  %v1793_v59 = vcombine.low %v1075_v48, %v1079_v49 }
 0x216   :  { %1520 = vmatpush1.bf16.msra.mxu1 %v1773_v60  ;;  %v1784_v60 = vcombine.high %v1066_v54, %v1070_v55 }
 0x217   :  { %1521 = vmatprep.subr.bf16.mxu1 %v1766_v4  ;;  %v1776_v4 = vcombine.high %v1058_v62, %v1062_v63 }
 0x21a   :  { %1522 = vmatpush1.bf16.msra.mxu1 %v1765_v3  ;;  %v1785_v3 = vcombine.low %v1067_v56, %v1071_v57 }
 0x21b   :  { %1523 = vmatprep.subr.bf16.mxu1 %v1758_v12  ;;  %v1768_v12 = vcombine.high %v1050_v6, %v1054_v7 }
 0x21e   :  { %1524 = vmatpush1.bf16.msra.mxu1 %v1757_v11  ;;  %v1777_v11 = vcombine.low %v1059_v0, %v1063_v1 }
 0x21f   :  { %1595 = vmatprep.subr.bf16.mxu1 %v1818_v21 }
 0x2c1   :  { %v1030_v23 = vpop.f32.mrf.mxu1 }
 0x2c2   :  { %v1031_v25 = vadd.f32 %v1746_v22, %v1030_v23 }
 0x2c3   :  { %v1963_v24 = vpop.f32.mrf.mxu1 }
 0x2c4   :  { %v1037_v33 = vmax.f32 %v1031_v25, 0.0  ;;  %v1106_v24 = vlaneseq }
 0x2c5   :  { %v1033_v26 = vpop.f32.mrf.mxu1 }
 0x2c6   :  { %v1034_v27 = vadd.f32 %v1746_v22, %v1033_v26  ;;  %v1759_v22 = vcombine.low %v1042_v14, %v1046_v15  ;;  %v1107_v25 = vshrl.u32 %v1106_v24, 7 }
 0x2c7   :  { %v1964_v29 = vpop.f32.mrf.mxu1 }
 0x2c8   :  { %v1038_v34 = vmax.f32 %v1034_v27, 0.0  ;;  %v1108_v26 = vsub.s32 0, %v1107_v25  ;;  %v1116_v27 = vsub.s32 2, %v1107_v25  ;;  %v1112_v29 = vsub.s32 1, %v1107_v25 }
 0x2c9   :  { %v1120_v30 = vsub.s32 3, %v1107_v25  ;;  %v1136_v54 = vsub.s32 7, %v1107_v25 }
 0x2ca   :  { %v2274_v35 = vpack.c.bf16 %v1038_v34, %v1037_v33  ;;  %v1109_v31 = vrot.slane %v1104_v28, %v1108_v26  ;;  %v1117_v32 = vrot.slane %v1104_v28, %v1116_v27  ;;  %v1113_v33 = vrot.slane %v1104_v28, %v1112_v29 }
 0x2cb   :  { %v1121_v34 = vrot.slane %v1104_v28, %v1120_v30 }
 0x2cc   :  { %1499 = vmatmul.mubr.bf16.vlgmr.msra.gmra.mxu0 %v2274_v35  ;;  %1542 = vmatmul.mubr.bf16.vlgmr.msra.gmra.mxu1 %v2274_v35 }
 0x2cd   :  { %1553 = vmatpush1.bf16.msra.mxu0 %v1815_v16  ;;  %1596 = vmatpush1.bf16.msra.mxu1 %v1817_v20  ;;  %v1043_v16 = vld [vmem:[#allocation6 + $0x18] sm:$0xff]  ;;  %v1760_v20 = vcombine.high %v1042_v14, %v1046_v15 }
 0x2ce   :  { %1554 = vmatprep.subr.bf16.mxu0 %v1808_v36  ;;  %1597 = vmatprep.subr.bf16.mxu1 %v1810_v37  ;;  %v1762_v21 = vcombine.high %v1043_v16, %v1047_v18  ;;  %v1761_v23 = vcombine.low %v1043_v16, %v1047_v18 }
 0x2cf   :  { %1584 = vmatprep.mubr.bf16.mxu0 %v2128_v19  ;;  %1627 = vmatprep.mubr.bf16.mxu1 %v2128_v19  ;;  %v1769_v19 = vcombine.low %v1051_v8, %v1055_v9 }
 0x2d1   :  { %1555 = vmatpush1.bf16.msra.mxu0 %v1807_v42  ;;  %1598 = vmatpush1.bf16.msra.mxu1 %v1809_v43 }
 0x2d2   :  { %1556 = vmatprep.subr.bf16.mxu0 %v1800_v44  ;;  %1599 = vmatprep.subr.bf16.mxu1 %v1802_v45 }
 0x2d5   :  { %1557 = vmatpush1.bf16.msra.mxu0 %v1799_v50  ;;  %1600 = vmatpush1.bf16.msra.mxu1 %v1801_v51  ;;  %v1124_v51 = vsub.s32 4, %v1107_v25 }
 0x2d6   :  { %1558 = vmatprep.subr.bf16.mxu0 %v1792_v52  ;;  %1601 = vmatprep.subr.bf16.mxu1 %v1794_v53  ;;  %v1132_v52 = vsub.s32 6, %v1107_v25  ;;  %v1128_v53 = vsub.s32 5, %v1107_v25 }
 0x2d7   :  { %v1125_v55 = vrot.slane %v1104_v28, %v1124_v51 }
 0x2d8   :  { %v1133_v56 = vrot.slane %v1104_v28, %v1132_v52  ;;  %v1129_v57 = vrot.slane %v1104_v28, %v1128_v53 }
 0x2d9   :  { %1559 = vmatpush1.bf16.msra.mxu0 %v1791_v58  ;;  %1602 = vmatpush1.bf16.msra.mxu1 %v1793_v59  ;;  %v1137_v58 = vrot.slane %v1104_v28, %v1136_v54 }
 0x2da   :  { %1560 = vmatprep.subr.bf16.mxu0 %v1784_v60  ;;  %1603 = vmatprep.subr.bf16.mxu1 %v1786_v61 }
 0x2dd   :  { %1561 = vmatpush1.bf16.msra.mxu0 %v1783_v2  ;;  %1604 = vmatpush1.bf16.msra.mxu1 %v1785_v3 }
 0x2de   :  { %1562 = vmatprep.subr.bf16.mxu0 %v1776_v4  ;;  %1605 = vmatprep.subr.bf16.mxu1 %v1778_v5 }
 0x2e1   :  { %1563 = vmatpush1.bf16.msra.mxu0 %v1775_v10  ;;  %1606 = vmatpush1.bf16.msra.mxu1 %v1777_v11 }
 0x2e2   :  { %1564 = vmatprep.subr.bf16.mxu0 %v1768_v12  ;;  %1607 = vmatprep.subr.bf16.mxu1 %v1770_v13 }
 0x2e5   :  { %1565 = vmatpush1.bf16.msra.mxu0 %v1767_v17  ;;  %1608 = vmatpush1.bf16.msra.mxu1 %v1769_v19 }
 0x2e6   :  { %1566 = vmatprep.subr.bf16.mxu0 %v1760_v20  ;;  %1609 = vmatprep.subr.bf16.mxu1 %v1762_v21 }
 0x2e9   :  { %1567 = vmatpush1.bf16.msra.mxu0 %v1759_v22  ;;  %1610 = vmatpush1.bf16.msra.mxu1 %v1761_v23 }
 0x2ec   :  { %1585 = vmatmul.mubr.bf16.vlgmr.msra.gmra.mxu0 %v2274_v35  ;;  %1628 = vmatmul.mubr.bf16.vlgmr.msra.gmra.mxu1 %v2274_v35 }
 0x38c   :  { %v1500_v36 = vpop.f32.mrf.mxu0  ;;  %v1543_v37 = vpop.f32.mrf.mxu1 }
 0x38d   :  { %v1501_v38 = vadd.f32 %v1500_v36, %v1109_v31  ;;  %v1544_v39 = vadd.f32 %v1543_v37, %v1117_v32 }
 0x38e   :  { %v1502_v40 = vpop.f32.mrf.mxu0  ;;  %v1545_v35 = vpop.f32.mrf.mxu1 }
 0x38f   :  { %1638 = vst [vmem:[%s2340_s9] sm:$0xff] %v1501_v38  ;;  %1640 = vst [vmem:[%s2340_s9 + $0x10] sm:$0xff] %v1544_v39  ;;  %v1503_v41 = vadd.f32 %v1502_v40, %v1113_v33  ;;  %v1546_v42 = vadd.f32 %v1545_v35, %v1121_v34 }
 0x390   :  { %v1504_v43 = vpop.f32.mrf.mxu0  ;;  %v1547_v44 = vpop.f32.mrf.mxu1 }
 0x391   :  { %1639 = vst [vmem:[%s2340_s9 + $0x8] sm:$0xff] %v1503_v41  ;;  %1641 = vst [vmem:[%s2340_s9 + $0x18] sm:$0xff] %v1546_v42  ;;  %v1505_v45 = vadd.f32 %v1504_v43, %v1109_v31  ;;  %v1548_v46 = vadd.f32 %v1547_v44, %v1117_v32 }
 0x392   :  { %v1506_v47 = vpop.f32.mrf.mxu0  ;;  %v1549_v48 = vpop.f32.mrf.mxu1 }
 0x393   :  { %1646 = vst [vmem:[%s2340_s9 + $0x40] sm:$0xff] %v1505_v45  ;;  %1648 = vst [vmem:[%s2340_s9 + $0x50] sm:$0xff] %v1548_v46  ;;  %v1507_v49 = vadd.f32 %v1506_v47, %v1113_v33  ;;  %v1550_v50 = vadd.f32 %v1549_v48, %v1121_v34 }
 0x395   :  { %1647 = vst [vmem:[%s2340_s9 + $0x48] sm:$0xff] %v1507_v49  ;;  %1649 = vst [vmem:[%s2340_s9 + $0x58] sm:$0xff] %v1550_v50 }
 0x3ac   :  { %v1586_v59 = vpop.f32.mrf.mxu0  ;;  %v1629_v60 = vpop.f32.mrf.mxu1 }
 0x3ad   :  { %v1587_v61 = vadd.f32 %v1586_v59, %v1125_v55  ;;  %v1630_v62 = vadd.f32 %v1629_v60, %v1133_v56 }
 0x3ae   :  { %v1588_v63 = vpop.f32.mrf.mxu0  ;;  %v1631_v0 = vpop.f32.mrf.mxu1 }
 0x3af   :  { %1642 = vst [vmem:[%s2340_s9 + $0x20] sm:$0xff] %v1587_v61  ;;  %1644 = vst [vmem:[%s2340_s9 + $0x30] sm:$0xff] %v1630_v62  ;;  %v1589_v1 = vadd.f32 %v1588_v63, %v1129_v57  ;;  %v1632_v2 = vadd.f32 %v1631_v0, %v1137_v58 }
 0x3b0   :  { %v1590_v3 = vpop.f32.mrf.mxu0  ;;  %v1633_v4 = vpop.f32.mrf.mxu1 }
 0x3b1   :  { %1643 = vst [vmem:[%s2340_s9 + $0x28] sm:$0xff] %v1589_v1  ;;  %1645 = vst [vmem:[%s2340_s9 + $0x38] sm:$0xff] %v1632_v2  ;;  %v1591_v5 = vadd.f32 %v1590_v3, %v1125_v55  ;;  %v1634_v6 = vadd.f32 %v1633_v4, %v1133_v56 }
 0x3b2   :  { %v1592_v7 = vpop.f32.mrf.mxu0  ;;  %v1635_v8 = vpop.f32.mrf.mxu1 }
 0x3b3   :  { %1650 = vst [vmem:[%s2340_s9 + $0x60] sm:$0xff] %v1591_v5  ;;  %1652 = vst [vmem:[%s2340_s9 + $0x70] sm:$0xff] %v1634_v6  ;;  %v1593_v9 = vadd.f32 %v1592_v7, %v1129_v57  ;;  %v1636_v10 = vadd.f32 %v1635_v8, %v1137_v58 }
 0x3b5   :  { %1651 = vst [vmem:[%s2340_s9 + $0x68] sm:$0xff] %v1593_v9  ;;  %1653 = vst [vmem:[%s2340_s9 + $0x78] sm:$0xff] %v1636_v10 }
 0x3b6   :  { %1662 = vsyncpa [#allocation3], 1 }
 0x3b7   :  { %1663 = vsyncpa [#allocation5], 1 }

</bundles_post_ra>
